<compile_context>
chip_gen: v7x
topology: tpu7x:2x2x1
jax: 0.10.0
libtpu: 0.0.40
codegen_flags: <defaults>
</compile_context>

<pallas_src>
import functools

import jax
import jax.numpy as jnp
from jax import lax
from jax.experimental import pallas as pl
from jax.experimental.pallas import tpu as pltpu


# ------------------------------ fused kernel --------------------------------
def fused_rnn_kernel(x_ref, wih1_ref, whh1_ref, b1_ref,
                     wih2_ref, whh2_ref, b2_ref,
                     wfc_ref, bfc_ref, o_ref, *, batch, steps):
    """Whole model in one invocation.

    x_ref   : (T*B, I)  time-major flattened input (row t*B+b = timestep t, batch b)
    wih1_ref: (I, H)    W_ih1^T
    whh1_ref: (H, H)    W_hh1^T
    b1_ref  : (1, H)    b_ih1 + b_hh1
    wih2_ref: (H, H)    W_ih2^T
    whh2_ref: (H, H)    W_hh2^T
    b2_ref  : (1, H)    b_ih2 + b_hh2
    wfc_ref : (H, O)    fc weight, transposed
    bfc_ref : (1, O)    fc bias
    o_ref   : (B, O)    sigmoid(fc(relu(out2)[:, -1, :]))
    """
    B, T = batch, steps
    H = whh1_ref.shape[0]

    # Weights / biases loaded once (hoisted out of the unrolled time loop).
    whh1 = whh1_ref[...]
    wih2 = wih2_ref[...]
    whh2 = whh2_ref[...]
    b2 = b2_ref[...]                                   # (1, H), broadcasts

    # All x-dependent layer-1 work: ONE batched matmul, off the serial chain.
    xproj1 = (jnp.dot(x_ref[...], wih1_ref[...],
                      preferred_element_type=jnp.float32)
              + b1_ref[...])                           # (T*B, H)

    h1 = jnp.zeros((B, H), jnp.float32)                # pre-ReLU layer-1 state
    h2 = jnp.zeros((B, H), jnp.float32)                # pre-ReLU layer-2 state
    proj2 = jnp.zeros((B, H), jnp.float32)             # overwritten before use

    # Skewed, fully-unrolled schedule: iteration k runs layer-1 step k and
    # layer-2 step k-1 (independent -> overlapped matmul->tanh chains).
    for k in range(T + 1):
        proj2_for_l2 = proj2                           # layer-2 step k-1 input
        if k < T:
            # Layer 1 step k: one (B,H)x(H,H) recurrent matmul + tanh.
            h1 = jnp.tanh(
                xproj1[k * B:(k + 1) * B, :]
                + jnp.dot(h1, whh1, preferred_element_type=jnp.float32))
            # Layer-2 input projection for step k (feeds iteration k+1).
            proj2 = (jnp.dot(jnp.maximum(h1, 0.0), wih2,
                             preferred_element_type=jnp.float32) + b2)
        if k >= 1:
            # Layer 2 step k-1.
            h2 = jnp.tanh(
                proj2_for_l2
                + jnp.dot(h2, whh2, preferred_element_type=jnp.float32))

    last = jnp.maximum(h2, 0.0)                        # F.relu(out2)[:, -1, :]
    logits = (jnp.dot(last, wfc_ref[...],
                      preferred_element_type=jnp.float32) + bfc_ref[...])
    # Exact sigmoid via tanh identity: one EUP op, no approx-reciprocal error.
    o_ref[...] = 0.5 * (jnp.tanh(0.5 * logits) + 1.0)


# -------------------------- one-time parameter prep --------------------------
def prepare_params(params):
    """Hoist all transposes / concats / casts / bias sums out of the forward."""
    H = params["rnn1_w_hh"].shape[0]
    O = params["fc_w"].shape[0]
    return {
        "wih1": params["rnn1_w_ih"].T.astype(jnp.float32),             # (I, H)
        "whh1": params["rnn1_w_hh"].T.astype(jnp.float32),             # (H, H)
        "b1": (params["rnn1_b_ih"] + params["rnn1_b_hh"]
               ).reshape(1, H).astype(jnp.float32),
        "wih2": params["rnn2_w_ih"].T.astype(jnp.float32),             # (H, H)
        "whh2": params["rnn2_w_hh"].T.astype(jnp.float32),             # (H, H)
        "b2": (params["rnn2_b_ih"] + params["rnn2_b_hh"]
               ).reshape(1, H).astype(jnp.float32),
        "wfc": params["fc_w"].T.astype(jnp.float32),                   # (H, O)
        "bfc": params["fc_b"].reshape(1, O).astype(jnp.float32),       # (1, O)
    }


# ------------------------------- full forward -------------------------------
def my_rnn_model_forward(x, prep, input_size):
    """x: (B, ..., input_size) batch-first, like the PyTorch module."""
    B = x.shape[0]
    x = x.reshape(B, -1, input_size).astype(jnp.float32)   # x.view(batch, -1, I)
    T = x.shape[1]
    O = prep["wfc"].shape[1]

    # Time-major flatten so per-step reads inside the kernel are static
    # leading-row slices (no per-step sublane gather of a (B,T,I) tile).
    x_tm = jnp.swapaxes(x, 0, 1).reshape(T * B, input_size)

    vmem = pl.BlockSpec(memory_space=pltpu.MemorySpace.VMEM)
    return pl.pallas_call(
        functools.partial(fused_rnn_kernel, batch=B, steps=T),
        out_shape=jax.ShapeDtypeStruct((B, O), jnp.float32),
        in_specs=[vmem] * 9,
        out_specs=vmem,
    )(x_tm, prep["wih1"], prep["whh1"], prep["b1"],
      prep["wih2"], prep["whh2"], prep["b2"], prep["wfc"], prep["bfc"])


# ------------------------------ JAX reference -------------------------------
def reference_forward(x, params):
    def run_rnn(inp, w_ih, w_hh, b_ih, b_hh):
        B = inp.shape[0]
        H = w_ih.shape[0]
        h0 = jnp.zeros((B, H), jnp.float32)

        def step(h, x_t):
            h_new = jnp.tanh(x_t @ w_ih.T + b_ih + h @ w_hh.T + b_hh)
            return h_new, h_new

        _, outs = lax.scan(step, h0, jnp.transpose(inp, (1, 0, 2)))
        return jnp.transpose(outs, (1, 0, 2))            # (B, T, H)

    out1 = jax.nn.relu(run_rnn(x, params["rnn1_w_ih"], params["rnn1_w_hh"],
                               params["rnn1_b_ih"], params["rnn1_b_hh"]))
    out2 = jax.nn.relu(run_rnn(out1, params["rnn2_w_ih"], params["rnn2_w_hh"],
                               params["rnn2_b_ih"], params["rnn2_b_hh"]))
    logits = out2[:, -1, :] @ params["fc_w"].T + params["fc_b"]
    return jax.nn.sigmoid(logits)


# ----------------------------------- main ------------------------------------
if __name__ == "__main__":
    input_size = 10
    hidden_size = 32
    output_size = 4
    B, T = 2, 8

    key = jax.random.PRNGKey(0)
    keys = jax.random.split(key, 12)
    s_h = 1.0 / jnp.sqrt(hidden_size)

    params = {
        "rnn1_w_ih": jax.random.uniform(keys[0], (hidden_size, input_size), jnp.float32, -s_h, s_h),
        "rnn1_w_hh": jax.random.uniform(keys[1], (hidden_size, hidden_size), jnp.float32, -s_h, s_h),
        "rnn1_b_ih": jax.random.uniform(keys[2], (hidden_size,), jnp.float32, -s_h, s_h),
        "rnn1_b_hh": jax.random.uniform(keys[3], (hidden_size,), jnp.float32, -s_h, s_h),
        "rnn2_w_ih": jax.random.uniform(keys[4], (hidden_size, hidden_size), jnp.float32, -s_h, s_h),
        "rnn2_w_hh": jax.random.uniform(keys[5], (hidden_size, hidden_size), jnp.float32, -s_h, s_h),
        "rnn2_b_ih": jax.random.uniform(keys[6], (hidden_size,), jnp.float32, -s_h, s_h),
        "rnn2_b_hh": jax.random.uniform(keys[7], (hidden_size,), jnp.float32, -s_h, s_h),
        "fc_w": jax.random.uniform(keys[8], (output_size, hidden_size), jnp.float32, -s_h, s_h),
        "fc_b": jax.random.uniform(keys[9], (output_size,), jnp.float32, -s_h, s_h),
    }

    x = jax.random.normal(keys[10], (B, T, input_size), jnp.float32)

    prep = jax.tree_util.tree_map(jax.block_until_ready,
                                  prepare_params(params))   # one-time weight prep

    out = jax.block_until_ready(my_rnn_model_forward(x, prep, input_size))
    ref = jax.block_until_ready(reference_forward(x, params))

    assert out.shape == (B, output_size), out.shape
    assert jnp.allclose(out, ref, atol=1e-2, rtol=1e-2), (out, ref)

    print("KERNEL_OK")
</pallas_src>

<mosaic_0001>
module attributes {stable_mosaic.version = 11 : i64} {
  func.func @fused_rnn_kernel(%arg0: memref<16x10xf32, #tpu.memory_space<vmem>>, %arg1: memref<10x32xf32, #tpu.memory_space<vmem>>, %arg2: memref<32x32xf32, #tpu.memory_space<vmem>>, %arg3: memref<1x32xf32, #tpu.memory_space<vmem>>, %arg4: memref<32x32xf32, #tpu.memory_space<vmem>>, %arg5: memref<32x32xf32, #tpu.memory_space<vmem>>, %arg6: memref<1x32xf32, #tpu.memory_space<vmem>>, %arg7: memref<32x4xf32, #tpu.memory_space<vmem>>, %arg8: memref<1x4xf32, #tpu.memory_space<vmem>>, %arg9: memref<2x4xf32, #tpu.memory_space<vmem>>) attributes {dimension_semantics = [], scalar_prefetch = 0 : i64, scratch_operands = 0 : i64, tpu.core_type = #tpu.core_type<tc>} {
    %c0 = arith.constant 0 : index
    %c0_0 = arith.constant 0 : index
    %0 = vector.load %arg2[%c0, %c0_0] : memref<32x32xf32, #tpu.memory_space<vmem>>, vector<32x32xf32>
    %c0_1 = arith.constant 0 : index
    %c0_2 = arith.constant 0 : index
    %1 = vector.load %arg4[%c0_1, %c0_2] : memref<32x32xf32, #tpu.memory_space<vmem>>, vector<32x32xf32>
    %c0_3 = arith.constant 0 : index
    %c0_4 = arith.constant 0 : index
    %2 = vector.load %arg5[%c0_3, %c0_4] : memref<32x32xf32, #tpu.memory_space<vmem>>, vector<32x32xf32>
    %c0_5 = arith.constant 0 : index
    %c0_6 = arith.constant 0 : index
    %3 = vector.load %arg6[%c0_5, %c0_6] : memref<1x32xf32, #tpu.memory_space<vmem>>, vector<1x32xf32>
    %c0_7 = arith.constant 0 : index
    %c0_8 = arith.constant 0 : index
    %4 = vector.load %arg0[%c0_7, %c0_8] : memref<16x10xf32, #tpu.memory_space<vmem>>, vector<16x10xf32>
    %c0_9 = arith.constant 0 : index
    %c0_10 = arith.constant 0 : index
    %5 = vector.load %arg1[%c0_9, %c0_10] : memref<10x32xf32, #tpu.memory_space<vmem>>, vector<10x32xf32>
    %cst = arith.constant dense<0.000000e+00> : vector<16x32xf32>
    %6 = tpu.matmul %4, %5, %cst {dimension_numbers = #tpu.dot_dimension_numbers<[1], [0], [0], [1], [0, 0, 1, 1], [], []>} : vector<16x10xf32>, vector<10x32xf32>, vector<16x32xf32> -> vector<16x32xf32>
    %c0_11 = arith.constant 0 : index
    %c0_12 = arith.constant 0 : index
    %7 = vector.load %arg3[%c0_11, %c0_12] : memref<1x32xf32, #tpu.memory_space<vmem>>, vector<1x32xf32>
    %8 = vector.broadcast %7 : vector<1x32xf32> to vector<16x32xf32>
    %9 = arith.addf %6, %8 : vector<16x32xf32>
    %cst_13 = arith.constant 0.000000e+00 : f32
    %10 = vector.broadcast %cst_13 : f32 to vector<2x32xf32>
    %cst_14 = arith.constant 0.000000e+00 : f32
    %11 = vector.broadcast %cst_14 : f32 to vector<2x32xf32>
    %12 = vector.extract_strided_slice %9 {offsets = [0, 0], sizes = [2, 32], strides = [1, 1]} : vector<16x32xf32> to vector<2x32xf32>
    %cst_15 = arith.constant dense<0.000000e+00> : vector<2x32xf32>
    %13 = tpu.matmul %10, %0, %cst_15 {dimension_numbers = #tpu.dot_dimension_numbers<[1], [0], [0], [1], [0, 0, 1, 1], [], []>} : vector<2x32xf32>, vector<32x32xf32>, vector<2x32xf32> -> vector<2x32xf32>
    %14 = arith.addf %12, %13 : vector<2x32xf32>
    %15 = math.tanh %14 : vector<2x32xf32>
    %cst_16 = arith.constant 0.000000e+00 : f32
    %16 = vector.broadcast %cst_16 : f32 to vector<2x32xf32>
    %17 = arith.maximumf %15, %16 : vector<2x32xf32>
    %cst_17 = arith.constant dense<0.000000e+00> : vector<2x32xf32>
    %18 = tpu.matmul %17, %1, %cst_17 {dimension_numbers = #tpu.dot_dimension_numbers<[1], [0], [0], [1], [0, 0, 1, 1], [], []>} : vector<2x32xf32>, vector<32x32xf32>, vector<2x32xf32> -> vector<2x32xf32>
    %19 = vector.broadcast %3 : vector<1x32xf32> to vector<2x32xf32>
    %20 = arith.addf %18, %19 : vector<2x32xf32>
    %21 = vector.extract_strided_slice %9 {offsets = [2, 0], sizes = [2, 32], strides = [1, 1]} : vector<16x32xf32> to vector<2x32xf32>
    %cst_18 = arith.constant dense<0.000000e+00> : vector<2x32xf32>
    %22 = tpu.matmul %15, %0, %cst_18 {dimension_numbers = #tpu.dot_dimension_numbers<[1], [0], [0], [1], [0, 0, 1, 1], [], []>} : vector<2x32xf32>, vector<32x32xf32>, vector<2x32xf32> -> vector<2x32xf32>
    %23 = arith.addf %21, %22 : vector<2x32xf32>
    %24 = math.tanh %23 : vector<2x32xf32>
    %cst_19 = arith.constant 0.000000e+00 : f32
    %25 = vector.broadcast %cst_19 : f32 to vector<2x32xf32>
    %26 = arith.maximumf %24, %25 : vector<2x32xf32>
    %cst_20 = arith.constant dense<0.000000e+00> : vector<2x32xf32>
    %27 = tpu.matmul %26, %1, %cst_20 {dimension_numbers = #tpu.dot_dimension_numbers<[1], [0], [0], [1], [0, 0, 1, 1], [], []>} : vector<2x32xf32>, vector<32x32xf32>, vector<2x32xf32> -> vector<2x32xf32>
    %28 = vector.broadcast %3 : vector<1x32xf32> to vector<2x32xf32>
    %29 = arith.addf %27, %28 : vector<2x32xf32>
    %cst_21 = arith.constant dense<0.000000e+00> : vector<2x32xf32>
    %30 = tpu.matmul %11, %2, %cst_21 {dimension_numbers = #tpu.dot_dimension_numbers<[1], [0], [0], [1], [0, 0, 1, 1], [], []>} : vector<2x32xf32>, vector<32x32xf32>, vector<2x32xf32> -> vector<2x32xf32>
    %31 = arith.addf %20, %30 : vector<2x32xf32>
    %32 = math.tanh %31 : vector<2x32xf32>
    %33 = vector.extract_strided_slice %9 {offsets = [4, 0], sizes = [2, 32], strides = [1, 1]} : vector<16x32xf32> to vector<2x32xf32>
    %cst_22 = arith.constant dense<0.000000e+00> : vector<2x32xf32>
    %34 = tpu.matmul %24, %0, %cst_22 {dimension_numbers = #tpu.dot_dimension_numbers<[1], [0], [0], [1], [0, 0, 1, 1], [], []>} : vector<2x32xf32>, vector<32x32xf32>, vector<2x32xf32> -> vector<2x32xf32>
    %35 = arith.addf %33, %34 : vector<2x32xf32>
    %36 = math.tanh %35 : vector<2x32xf32>
    %cst_23 = arith.constant 0.000000e+00 : f32
    %37 = vector.broadcast %cst_23 : f32 to vector<2x32xf32>
    %38 = arith.maximumf %36, %37 : vector<2x32xf32>
    %cst_24 = arith.constant dense<0.000000e+00> : vector<2x32xf32>
    %39 = tpu.matmul %38, %1, %cst_24 {dimension_numbers = #tpu.dot_dimension_numbers<[1], [0], [0], [1], [0, 0, 1, 1], [], []>} : vector<2x32xf32>, vector<32x32xf32>, vector<2x32xf32> -> vector<2x32xf32>
    %40 = vector.broadcast %3 : vector<1x32xf32> to vector<2x32xf32>
    %41 = arith.addf %39, %40 : vector<2x32xf32>
    %cst_25 = arith.constant dense<0.000000e+00> : vector<2x32xf32>
    %42 = tpu.matmul %32, %2, %cst_25 {dimension_numbers = #tpu.dot_dimension_numbers<[1], [0], [0], [1], [0, 0, 1, 1], [], []>} : vector<2x32xf32>, vector<32x32xf32>, vector<2x32xf32> -> vector<2x32xf32>
    %43 = arith.addf %29, %42 : vector<2x32xf32>
    %44 = math.tanh %43 : vector<2x32xf32>
    %45 = vector.extract_strided_slice %9 {offsets = [6, 0], sizes = [2, 32], strides = [1, 1]} : vector<16x32xf32> to vector<2x32xf32>
    %cst_26 = arith.constant dense<0.000000e+00> : vector<2x32xf32>
    %46 = tpu.matmul %36, %0, %cst_26 {dimension_numbers = #tpu.dot_dimension_numbers<[1], [0], [0], [1], [0, 0, 1, 1], [], []>} : vector<2x32xf32>, vector<32x32xf32>, vector<2x32xf32> -> vector<2x32xf32>
    %47 = arith.addf %45, %46 : vector<2x32xf32>
    %48 = math.tanh %47 : vector<2x32xf32>
    %cst_27 = arith.constant 0.000000e+00 : f32
    %49 = vector.broadcast %cst_27 : f32 to vector<2x32xf32>
    %50 = arith.maximumf %48, %49 : vector<2x32xf32>
    %cst_28 = arith.constant dense<0.000000e+00> : vector<2x32xf32>
    %51 = tpu.matmul %50, %1, %cst_28 {dimension_numbers = #tpu.dot_dimension_numbers<[1], [0], [0], [1], [0, 0, 1, 1], [], []>} : vector<2x32xf32>, vector<32x32xf32>, vector<2x32xf32> -> vector<2x32xf32>
    %52 = vector.broadcast %3 : vector<1x32xf32> to vector<2x32xf32>
    %53 = arith.addf %51, %52 : vector<2x32xf32>
    %cst_29 = arith.constant dense<0.000000e+00> : vector<2x32xf32>
    %54 = tpu.matmul %44, %2, %cst_29 {dimension_numbers = #tpu.dot_dimension_numbers<[1], [0], [0], [1], [0, 0, 1, 1], [], []>} : vector<2x32xf32>, vector<32x32xf32>, vector<2x32xf32> -> vector<2x32xf32>
    %55 = arith.addf %41, %54 : vector<2x32xf32>
    %56 = math.tanh %55 : vector<2x32xf32>
    %57 = vector.extract_strided_slice %9 {offsets = [8, 0], sizes = [2, 32], strides = [1, 1]} : vector<16x32xf32> to vector<2x32xf32>
    %cst_30 = arith.constant dense<0.000000e+00> : vector<2x32xf32>
    %58 = tpu.matmul %48, %0, %cst_30 {dimension_numbers = #tpu.dot_dimension_numbers<[1], [0], [0], [1], [0, 0, 1, 1], [], []>} : vector<2x32xf32>, vector<32x32xf32>, vector<2x32xf32> -> vector<2x32xf32>
    %59 = arith.addf %57, %58 : vector<2x32xf32>
    %60 = math.tanh %59 : vector<2x32xf32>
    %cst_31 = arith.constant 0.000000e+00 : f32
    %61 = vector.broadcast %cst_31 : f32 to vector<2x32xf32>
    %62 = arith.maximumf %60, %61 : vector<2x32xf32>
    %cst_32 = arith.constant dense<0.000000e+00> : vector<2x32xf32>
    %63 = tpu.matmul %62, %1, %cst_32 {dimension_numbers = #tpu.dot_dimension_numbers<[1], [0], [0], [1], [0, 0, 1, 1], [], []>} : vector<2x32xf32>, vector<32x32xf32>, vector<2x32xf32> -> vector<2x32xf32>
    %64 = vector.broadcast %3 : vector<1x32xf32> to vector<2x32xf32>
    %65 = arith.addf %63, %64 : vector<2x32xf32>
    %cst_33 = arith.constant dense<0.000000e+00> : vector<2x32xf32>
    %66 = tpu.matmul %56, %2, %cst_33 {dimension_numbers = #tpu.dot_dimension_numbers<[1], [0], [0], [1], [0, 0, 1, 1], [], []>} : vector<2x32xf32>, vector<32x32xf32>, vector<2x32xf32> -> vector<2x32xf32>
    %67 = arith.addf %53, %66 : vector<2x32xf32>
    %68 = math.tanh %67 : vector<2x32xf32>
    %69 = vector.extract_strided_slice %9 {offsets = [10, 0], sizes = [2, 32], strides = [1, 1]} : vector<16x32xf32> to vector<2x32xf32>
    %cst_34 = arith.constant dense<0.000000e+00> : vector<2x32xf32>
    %70 = tpu.matmul %60, %0, %cst_34 {dimension_numbers = #tpu.dot_dimension_numbers<[1], [0], [0], [1], [0, 0, 1, 1], [], []>} : vector<2x32xf32>, vector<32x32xf32>, vector<2x32xf32> -> vector<2x32xf32>
    %71 = arith.addf %69, %70 : vector<2x32xf32>
    %72 = math.tanh %71 : vector<2x32xf32>
    %cst_35 = arith.constant 0.000000e+00 : f32
    %73 = vector.broadcast %cst_35 : f32 to vector<2x32xf32>
    %74 = arith.maximumf %72, %73 : vector<2x32xf32>
    %cst_36 = arith.constant dense<0.000000e+00> : vector<2x32xf32>
    %75 = tpu.matmul %74, %1, %cst_36 {dimension_numbers = #tpu.dot_dimension_numbers<[1], [0], [0], [1], [0, 0, 1, 1], [], []>} : vector<2x32xf32>, vector<32x32xf32>, vector<2x32xf32> -> vector<2x32xf32>
    %76 = vector.broadcast %3 : vector<1x32xf32> to vector<2x32xf32>
    %77 = arith.addf %75, %76 : vector<2x32xf32>
    %cst_37 = arith.constant dense<0.000000e+00> : vector<2x32xf32>
    %78 = tpu.matmul %68, %2, %cst_37 {dimension_numbers = #tpu.dot_dimension_numbers<[1], [0], [0], [1], [0, 0, 1, 1], [], []>} : vector<2x32xf32>, vector<32x32xf32>, vector<2x32xf32> -> vector<2x32xf32>
    %79 = arith.addf %65, %78 : vector<2x32xf32>
    %80 = math.tanh %79 : vector<2x32xf32>
    %81 = vector.extract_strided_slice %9 {offsets = [12, 0], sizes = [2, 32], strides = [1, 1]} : vector<16x32xf32> to vector<2x32xf32>
    %cst_38 = arith.constant dense<0.000000e+00> : vector<2x32xf32>
    %82 = tpu.matmul %72, %0, %cst_38 {dimension_numbers = #tpu.dot_dimension_numbers<[1], [0], [0], [1], [0, 0, 1, 1], [], []>} : vector<2x32xf32>, vector<32x32xf32>, vector<2x32xf32> -> vector<2x32xf32>
    %83 = arith.addf %81, %82 : vector<2x32xf32>
    %84 = math.tanh %83 : vector<2x32xf32>
    %cst_39 = arith.constant 0.000000e+00 : f32
    %85 = vector.broadcast %cst_39 : f32 to vector<2x32xf32>
    %86 = arith.maximumf %84, %85 : vector<2x32xf32>
    %cst_40 = arith.constant dense<0.000000e+00> : vector<2x32xf32>
    %87 = tpu.matmul %86, %1, %cst_40 {dimension_numbers = #tpu.dot_dimension_numbers<[1], [0], [0], [1], [0, 0, 1, 1], [], []>} : vector<2x32xf32>, vector<32x32xf32>, vector<2x32xf32> -> vector<2x32xf32>
    %88 = vector.broadcast %3 : vector<1x32xf32> to vector<2x32xf32>
    %89 = arith.addf %87, %88 : vector<2x32xf32>
    %cst_41 = arith.constant dense<0.000000e+00> : vector<2x32xf32>
    %90 = tpu.matmul %80, %2, %cst_41 {dimension_numbers = #tpu.dot_dimension_numbers<[1], [0], [0], [1], [0, 0, 1, 1], [], []>} : vector<2x32xf32>, vector<32x32xf32>, vector<2x32xf32> -> vector<2x32xf32>
    %91 = arith.addf %77, %90 : vector<2x32xf32>
    %92 = math.tanh %91 : vector<2x32xf32>
    %93 = vector.extract_strided_slice %9 {offsets = [14, 0], sizes = [2, 32], strides = [1, 1]} : vector<16x32xf32> to vector<2x32xf32>
    %cst_42 = arith.constant dense<0.000000e+00> : vector<2x32xf32>
    %94 = tpu.matmul %84, %0, %cst_42 {dimension_numbers = #tpu.dot_dimension_numbers<[1], [0], [0], [1], [0, 0, 1, 1], [], []>} : vector<2x32xf32>, vector<32x32xf32>, vector<2x32xf32> -> vector<2x32xf32>
    %95 = arith.addf %93, %94 : vector<2x32xf32>
    %96 = math.tanh %95 : vector<2x32xf32>
    %cst_43 = arith.constant 0.000000e+00 : f32
    %97 = vector.broadcast %cst_43 : f32 to vector<2x32xf32>
    %98 = arith.maximumf %96, %97 : vector<2x32xf32>
    %cst_44 = arith.constant dense<0.000000e+00> : vector<2x32xf32>
    %99 = tpu.matmul %98, %1, %cst_44 {dimension_numbers = #tpu.dot_dimension_numbers<[1], [0], [0], [1], [0, 0, 1, 1], [], []>} : vector<2x32xf32>, vector<32x32xf32>, vector<2x32xf32> -> vector<2x32xf32>
    %100 = vector.broadcast %3 : vector<1x32xf32> to vector<2x32xf32>
    %101 = arith.addf %99, %100 : vector<2x32xf32>
    %cst_45 = arith.constant dense<0.000000e+00> : vector<2x32xf32>
    %102 = tpu.matmul %92, %2, %cst_45 {dimension_numbers = #tpu.dot_dimension_numbers<[1], [0], [0], [1], [0, 0, 1, 1], [], []>} : vector<2x32xf32>, vector<32x32xf32>, vector<2x32xf32> -> vector<2x32xf32>
    %103 = arith.addf %89, %102 : vector<2x32xf32>
    %104 = math.tanh %103 : vector<2x32xf32>
    %cst_46 = arith.constant dense<0.000000e+00> : vector<2x32xf32>
    %105 = tpu.matmul %104, %2, %cst_46 {dimension_numbers = #tpu.dot_dimension_numbers<[1], [0], [0], [1], [0, 0, 1, 1], [], []>} : vector<2x32xf32>, vector<32x32xf32>, vector<2x32xf32> -> vector<2x32xf32>
    %106 = arith.addf %101, %105 : vector<2x32xf32>
    %107 = math.tanh %106 : vector<2x32xf32>
    %cst_47 = arith.constant 0.000000e+00 : f32
    %108 = vector.broadcast %cst_47 : f32 to vector<2x32xf32>
    %109 = arith.maximumf %107, %108 : vector<2x32xf32>
    %c0_48 = arith.constant 0 : index
    %c0_49 = arith.constant 0 : index
    %110 = vector.load %arg7[%c0_48, %c0_49] : memref<32x4xf32, #tpu.memory_space<vmem>>, vector<32x4xf32>
    %cst_50 = arith.constant dense<0.000000e+00> : vector<2x4xf32>
    %111 = tpu.matmul %109, %110, %cst_50 {dimension_numbers = #tpu.dot_dimension_numbers<[1], [0], [0], [1], [0, 0, 1, 1], [], []>} : vector<2x32xf32>, vector<32x4xf32>, vector<2x4xf32> -> vector<2x4xf32>
    %c0_51 = arith.constant 0 : index
    %c0_52 = arith.constant 0 : index
    %112 = vector.load %arg8[%c0_51, %c0_52] : memref<1x4xf32, #tpu.memory_space<vmem>>, vector<1x4xf32>
    %113 = vector.broadcast %112 : vector<1x4xf32> to vector<2x4xf32>
    %114 = arith.addf %111, %113 : vector<2x4xf32>
    %cst_53 = arith.constant 5.000000e-01 : f32
    %115 = vector.broadcast %cst_53 : f32 to vector<2x4xf32>
    %116 = arith.mulf %115, %114 : vector<2x4xf32>
    %117 = math.tanh %116 : vector<2x4xf32>
    %cst_54 = arith.constant 1.000000e+00 : f32
    %118 = vector.broadcast %cst_54 : f32 to vector<2x4xf32>
    %119 = arith.addf %117, %118 : vector<2x4xf32>
    %cst_55 = arith.constant 5.000000e-01 : f32
    %120 = vector.broadcast %cst_55 : f32 to vector<2x4xf32>
    %121 = arith.mulf %120, %119 : vector<2x4xf32>
    %c0_56 = arith.constant 0 : index
    %c0_57 = arith.constant 0 : index
    %122 = vector.load %arg9[%c0_56, %c0_57] : memref<2x4xf32, #tpu.memory_space<vmem>>, vector<2x4xf32>
    tpu.vector_store %arg9[%c0_56, %c0_57], %121 {strides = array<i32>} : memref<2x4xf32, #tpu.memory_space<vmem>>, vector<2x4xf32>,
    return
  }
}

</mosaic_0001>

<bundles_post_ra>
// kernel: tpu_custom_call.1
= control target key start
LH: loop header
LB: loop body
LE: loop exit
PB: predicated region body
PF: predicated region fallthrough
CT: control target
= control target key end

     0   :  { %14 = vsyncpa [#allocation3], 0  ;;  %s3303_s0 = inlined_call_operand.hbm [shape: f32[16,10], index: 0, kind: input, shape index: {}]   ;;  %s3304_s1 = inlined_call_operand.hbm [shape: f32[10,32], index: 1, kind: input, shape index: {}]   ;;  %s3305_s2 = inlined_call_operand.vmem [shape: f32[32,32], index: 2, kind: input, shape index: {}]   ;;  %s3306_s3 = inlined_call_operand.vmem [shape: f32[1,32], index: 3, kind: input, shape index: {}]   ;;  %s3307_s4 = inlined_call_operand.hbm [shape: f32[32,32], index: 4, kind: input, shape index: {}]   ;;  %s3308_s5 = inlined_call_operand.hbm [shape: f32[32,32], index: 5, kind: input, shape index: {}]   ;;  %s3309_s6 = inlined_call_operand.vmem [shape: f32[1,32], index: 6, kind: input, shape index: {}]   ;;  %s3310_s7 = inlined_call_operand.vmem [shape: f32[32,4], index: 7, kind: input, shape index: {}]   ;;  %s3311_s8 = inlined_call_operand.vmem [shape: f32[1,4], index: 8, kind: input, shape index: {}]   ;;  %s3312_s9 = inlined_call_operand.hbm [shape: f32[2,4], index: 9, kind: output, shape index: {}]  }
   0x1   :  { %15 = vsyncpa [#allocation6], 0 }
   0x2   :  { %16 = vsyncpa [#allocation9], 0 }
   0x3   :  { %17 = vsyncpa [#allocation4], 0  ;;  %s2914_s30 = smov [#allocation5]   ;;  %s2915_s11 = smov [#allocation2]  }
   0x4   :  { %s35_s10 = sshll.u32 %s2914_s30, 4  ;;  %s23_s12 = sshll.u32 %s2915_s11, 4  ;;  %s36_s10 = int_to_ptr.vmem [resolvable:$true] %s35_s10  ;;  %s2975_s12 = int_to_ptr.vmem [resolvable:$true] %s23_s12 }
   0x5   :  { %s2796_s15 = scalar_lea.hbm %s3304_s1, 256 }
   0x6   :  { %p2797_p0 = scmp.ne.s32.totalorder %s3304_s1, %s2796_s15  ;;  %p2800_p1 = scmp.lt.u32.totalorder %s2796_s15, %s3304_s1 }
   0x8   :  { %p2802_p2 = pnand %p2800_p1, %p2797_p0 }
   0xa   :  { %2805 = shalt.err (!%p2802_p2)
}
   0xb   :  { %s2806_s20 = scalar_lea.vmem %s36_s10, 256  ;;  %p2811_p4 = scmp.lt.s32.totalorder %s36_s10, %s36_s10 }
   0xc   :  { %p2807_p3 = scmp.ne.s32.totalorder %s36_s10, %s2806_s20  ;;  %p2812_p5 = scmp.lt.s32.totalorder %s2806_s20, %s2806_s20 }
   0xe   :  { %p2813_p6 = por %p2812_p5, %p2811_p4 }
  0x10   :  { %p2814_p7 = pnand %p2813_p6, %p2807_p3 }
  0x12   :  { %2817 = shalt.err (!%p2814_p7)
}
  0x13   :  { %s2916_s21 = smov 128   ;;  %s2917_s22 = smov 8  }
  0x14   :  { %41 = dma.hbm_to_vmem [thread:$0]  %s3304_s1, 256, %s36_s10, [#allocation6], %s2916_s21, %s2916_s21, %s2917_s22  }
  0x15   :  { %s2818_s27 = scalar_lea.hbm %s3303_s0, 256 }
  0x16   :  { %p2819_p8 = scmp.ne.s32.totalorder %s3303_s0, %s2818_s27  ;;  %p2822_p9 = scmp.lt.u32.totalorder %s2818_s27, %s3303_s0 }
  0x18   :  { %p2824_p10 = pnand %p2822_p9, %p2819_p8 }
  0x1a   :  { %2827 = shalt.err (!%p2824_p10)
}
  0x1b   :  { %s2828_s13 = scalar_lea.vmem %s2975_s12, 256  ;;  %p2833_p12 = scmp.lt.s32.totalorder %s2975_s12, %s2975_s12 }
  0x1c   :  { %p2829_p11 = scmp.ne.s32.totalorder %s2975_s12, %s2828_s13  ;;  %p2834_p13 = scmp.lt.s32.totalorder %s2828_s13, %s2828_s13 }
  0x1e   :  { %p2835_p0 = por %p2834_p13, %p2833_p12 }
  0x20   :  { %p2836_p1 = pnand %p2835_p0, %p2829_p11 }
  0x22   :  { %2839 = shalt.err (!%p2836_p1)
}
  0x23   :  { %29 = dma.hbm_to_vmem [thread:$0]  %s3303_s0, 256, %s2975_s12, [#allocation3], %s2916_s21, %s2916_s21, %s2917_s22  }
  0x24   :  { %s2918_s14 = smov [#allocation7]   ;;  %s2919_s16 = smov [#allocation8]  }
  0x25   :  { %s51_s15 = sshll.u32 %s2918_s14, 4  ;;  %s63_s17 = sshll.u32 %s2919_s16, 4  ;;  %s52_s15 = int_to_ptr.vmem [resolvable:$true] %s51_s15  ;;  %s3012_s17 = int_to_ptr.vmem [resolvable:$true] %s63_s17 }
  0x26   :  { %s2840_s20 = scalar_lea.hbm %s3307_s4, 512 }
  0x27   :  { %p2841_p2 = scmp.ne.s32.totalorder %s3307_s4, %s2840_s20  ;;  %p2844_p3 = scmp.lt.u32.totalorder %s2840_s20, %s3307_s4 }
  0x29   :  { %p2846_p4 = pnand %p2844_p3, %p2841_p2 }
  0x2b   :  { %2849 = shalt.err (!%p2846_p4)
}
  0x2c   :  { %s2850_s0 = scalar_lea.vmem %s52_s15, 512  ;;  %p2855_p6 = scmp.lt.s32.totalorder %s52_s15, %s52_s15 }
  0x2d   :  { %p2851_p5 = scmp.ne.s32.totalorder %s52_s15, %s2850_s0  ;;  %p2856_p7 = scmp.lt.s32.totalorder %s2850_s0, %s2850_s0 }
  0x2f   :  { %p2857_p8 = por %p2856_p7, %p2855_p6 }
  0x31   :  { %p2858_p9 = pnand %p2857_p8, %p2851_p5 }
  0x33   :  { %2861 = shalt.err (!%p2858_p9)
}
  0x34   :  { %57 = dma.hbm_to_vmem [thread:$0]  %s3307_s4, 512, %s52_s15, [#allocation6], %s2916_s21, %s2916_s21, %s2917_s22  }
  0x35   :  { %s2862_s30 = scalar_lea.hbm %s3308_s5, 512 }
  0x36   :  { %p2863_p10 = scmp.ne.s32.totalorder %s3308_s5, %s2862_s30  ;;  %p2866_p11 = scmp.lt.u32.totalorder %s2862_s30, %s3308_s5 }
  0x38   :  { %p2868_p12 = pnand %p2866_p11, %p2863_p10 }
  0x3a   :  { %2871 = shalt.err (!%p2868_p12)
}
  0x3b   :  { %s2872_s14 = scalar_lea.vmem %s3012_s17, 512  ;;  %p2877_p0 = scmp.lt.s32.totalorder %s3012_s17, %s3012_s17 }
  0x3c   :  { %p2873_p13 = scmp.ne.s32.totalorder %s3012_s17, %s2872_s14  ;;  %p2878_p1 = scmp.lt.s32.totalorder %s2872_s14, %s2872_s14 }
  0x3e   :  { %p2879_p2 = por %p2878_p1, %p2877_p0 }
  0x40   :  { %p2880_p3 = pnand %p2879_p2, %p2873_p13 }
  0x42   :  { %2883 = shalt.err (!%p2880_p3)
}
  0x43   :  { %69 = dma.hbm_to_vmem [thread:$0]  %s3308_s5, 512, %s3012_s17, [#allocation9], %s2916_s21, %s2916_s21, %s2917_s22  }
  0x44   :  { %2906 = dma.done.wait [#allocation3], 256  }
  0x45   :  { %2907 = vsyncadd [#allocation3], 4294967040 }
  0x46   :  { %2908 = dma.done.wait [#allocation6], 768  }
  0x47   :  { %2909 = vsyncadd [#allocation6], 4294966528 }
  0x48   :  { %2910 = dma.done.wait [#allocation9], 512  }
  0x49   :  { %2911 = vsyncadd [#allocation9], 4294966784  ;;  %v2920_v0 = vmov 0.0|0.0   ;;  %vm2921_vm0 = vmmov 0   ;;  %v2922_v1 = vmov 0.0   ;;  %vm119_vm1 = vcmask 1041408  }
  0x4a   :  { %2577 = vmatprep.subr.bf16.mxu1 %v2920_v0  ;;  %2304 = vmatprep.mubr.msk.f32.mxu1 %vm2921_vm0, %v2922_v1  ;;  %vm2923_vm2 = vmmov 1   ;;  %vm112_vm4 = vcmask 80896   ;;  %v103_v2 = vld [vmem:[#allocation5] sm:$0xff]  ;;  %v104_v3 = vld [vmem:[#allocation5 + $0x8] sm:$0x3]  ;;  %v88_v4 = vld [vmem:[%s3305_s2] sm:$0xff] }
  0x4b   :  { %vm2572_vm3 = vmpackc.low %vm119_vm1, %vm2923_vm2  ;;  %v2571_v5 = vpack.c.bf16 %v104_v3, %v103_v2  ;;  %v89_v6 = vld [vmem:[%s3305_s2 + $0x8] sm:$0xff]  ;;  %v101_v7 = vld [vmem:[#allocation2] sm:$0xff]  ;;  %vm198_vm5 = vcmask 261120   ;;  %vm2112_vm6 = vcmask 25600  }
  0x4c   :  { %v3058_v8 = vpack.c.bf16 %v89_v6, %v88_v4  ;;  %2293 = vmatprep.mubr.msk.f32.mxu0 %vm112_vm4, %v101_v7  ;;  %v90_v9 = vld [vmem:[%s3305_s2 + $0x10] sm:$0xff]  ;;  %v91_v10 = vld [vmem:[%s3305_s2 + $0x18] sm:$0xff]  ;;  %v102_v11 = vld [vmem:[#allocation2 + $0x8] sm:$0xff] }
  0x4d   :  { %2573 = vmatprep.subr.msk.bf16.mxu0 %vm2572_vm3, %v2571_v5  ;;  %v3068_v12 = vpack.c.bf16 %v91_v10, %v90_v9  ;;  %v92_v13 = vld [vmem:[#allocation7] sm:$0xff]  ;;  %v93_v14 = vld [vmem:[#allocation7 + $0x8] sm:$0xff]  ;;  %v94_v15 = vld [vmem:[#allocation7 + $0x10] sm:$0xff] }
  0x4e   :  { %2579 = vmatpush3.bf16.msra.mxu1 %v3058_v8  ;;  %2576 = vmatpush3.bf16.msk.msra.mxu0 %vm2572_vm3, %v2571_v5  ;;  %v3084_v16 = vpack.c.bf16 %v93_v14, %v92_v13  ;;  %v95_v17 = vld [vmem:[#allocation7 + $0x18] sm:$0xff]  ;;  %v2131_v19 = vld [vmem:[%s3306_s3] ss:$0 sm:$0xff]  ;;  %v97_v34 = vld [vmem:[#allocation8 + $0x8] sm:$0xff] }
  0x4f   :  { %2580 = vmatprep.subr.bf16.mxu1 %v2920_v0  ;;  %2583 = vmatprep.subr.bf16.mxu0 %v2920_v0  ;;  %v3087_v18 = vpack.c.bf16 %v95_v17, %v94_v15  ;;  %v96_v33 = vld [vmem:[#allocation8] sm:$0xff]  ;;  %v98_v40 = vld [vmem:[#allocation8 + $0x10] sm:$0xff]  ;;  %v99_v41 = vld [vmem:[#allocation8 + $0x18] sm:$0xff] }
  0x50   :  { %v3115_v38 = vpack.c.bf16 %v97_v34, %v96_v33  ;;  %v3124_v42 = vpack.c.bf16 %v99_v41, %v98_v40  ;;  %v3144_v47 = vld [vmem:[%s3309_s6] ss:$0 sm:$0xff] }
  0x51   :  { %2294 = vmatmul.mubr.msk.f32.vlgmr.msra.gmra.mrb[0].mxu0 %vm112_vm4, %v102_v11 }
  0x52   :  { %2582 = vmatpush3.bf16.msra.mxu1 %v3068_v12  ;;  %2315 = vmatprep.mubr.msk.f32.mxu0 %vm2921_vm0, %v2922_v1 }
  0x53   :  { %2589 = vmatprep.subr.bf16.mxu1 %v2920_v0  ;;  %2585 = vmatpush3.bf16.msra.mxu0 %v3084_v16 }
  0x54   :  { %2586 = vmatprep.subr.bf16.mxu0 %v2920_v0 }
  0x55   :  { %2305 = vmatmul.mubr.f32.vlgmr.msra.gmra.mrb[0].mxu1 %v2922_v1 }
  0x56   :  { %2591 = vmatpush3.bf16.msra.mxu1 %v3058_v8  ;;  %2326 = vmatprep.mubr.msk.f32.mxu1 %vm2921_vm0, %v2922_v1 }
  0x57   :  { %2592 = vmatprep.subr.bf16.mxu1 %v2920_v0  ;;  %2588 = vmatpush3.bf16.msra.mxu0 %v3087_v18 }
  0x58   :  { %2595 = vmatprep.subr.bf16.mxu0 %v2920_v0 }
  0x5a   :  { %2594 = vmatpush3.bf16.msra.mxu1 %v3068_v12 }
  0x5b   :  { %2607 = vmatprep.subr.bf16.mxu1 %v2920_v0 }
 0x124   :  { %v2295_v20 = vpop.f32.mrb[0].mxu0 }
 0x125   :  { %v3095_v21 = vadd.f32 %v2295_v20, %v2131_v19  ;;  %v189_v22 = vpop.f32.mrb[1].mxu0 }
 0x126   :  { %v3097_v23 = vadd.f32 %v2131_v19, %v189_v22 }
 0x128   :  { %v268_v24 = vpop.f32.mrb[0].mxu1 }
 0x129   :  { %v272_v25 = vadd.f32 %v268_v24, %v3097_v23  ;;  %v2306_v26 = vpop.f32.mrb[1].mxu1 }
 0x12b   :  { %2762 = vtanh.f32 %v272_v25 }
 0x135   :  { %v2763_v27 = vpop.eup %2762 }
 0x136   :  { %2327 = vmatmul.mubr.msk.f32.vlgmr.msra.gmra.mrb[2].mxu1 %vm198_vm5, %v2763_v27  ;;  %v274_v28 = vmax.f32 %v2763_v27, 0.0 }
 0x137   :  { %2609 = vmatpush3.bf16.msra.mxu1 %v3058_v8  ;;  %2359 = vmatprep.mubr.msk.f32.mxu1 %vm2921_vm0, %v2922_v1 }
 0x138   :  { %2316 = vmatmul.mubr.msk.f32.vlgmr.msra.gmra.mrb[2].mxu0 %vm198_vm5, %v274_v28  ;;  %2610 = vmatprep.subr.bf16.mxu1 %v2920_v0 }
 0x139   :  { %2597 = vmatpush3.bf16.msra.mxu0 %v3084_v16  ;;  %2337 = vmatprep.mubr.msk.f32.mxu0 %vm2921_vm0, %v2922_v1 }
 0x13a   :  { %2598 = vmatprep.subr.bf16.mxu0 %v2920_v0 }
 0x13b   :  { %2612 = vmatpush3.bf16.msra.mxu1 %v3068_v12 }
 0x13c   :  { %2613 = vmatprep.subr.bf16.mxu1 %v2920_v0 }
 0x13d   :  { %2600 = vmatpush3.bf16.msra.mxu0 %v3087_v18 }
 0x13e   :  { %2601 = vmatprep.subr.bf16.mxu0 %v2920_v0 }
 0x209   :  { %v423_v29 = vpop.f32.mrb[2].mxu1 }
 0x20a   :  { %v428_v30 = vrot.slane %v423_v29, 6  ;;  %v2328_v31 = vpop.f32.mrb[3].mxu1 }
 0x20c   :  { %v430_v32 = vadd.f32 %v428_v30, %v3097_v23 }
 0x20e   :  { %2764 = vtanh.f32 %v430_v32 }
 0x218   :  { %v2765_v35 = vpop.eup %2764 }
 0x219   :  { %v580_v36 = vrot.slane %v2765_v35, 2  ;;  %v432_v37 = vmax.f32 %v2765_v35, 0.0 }
 0x21b   :  { %2360 = vmatmul.mubr.msk.f32.vlgmr.msra.gmra.mrb[4].mxu1 %vm198_vm5, %v580_v36  ;;  %v434_v39 = vrot.slane %v432_v37, 2 }
 0x21c   :  { %2615 = vmatpush3.bf16.msra.mxu1 %v3084_v16  ;;  %2370 = vmatprep.mubr.msk.f32.mxu1 %vm2921_vm0, %v2922_v1 }
 0x21d   :  { %2338 = vmatmul.mubr.msk.f32.vlgmr.msra.gmra.mrb[4].mxu0 %vm198_vm5, %v434_v39  ;;  %2616 = vmatprep.subr.bf16.mxu1 %v2920_v0 }
 0x21e   :  { %2603 = vmatpush3.bf16.msra.mxu0 %v3115_v38  ;;  %2348 = vmatprep.mubr.msk.f32.mxu0 %vm2921_vm0, %v2922_v1 }
 0x21f   :  { %2604 = vmatprep.subr.bf16.mxu0 %v2920_v0 }
 0x220   :  { %2618 = vmatpush3.bf16.msra.mxu1 %v3087_v18 }
 0x221   :  { %2625 = vmatprep.subr.bf16.mxu1 %v2920_v0 }
 0x222   :  { %2606 = vmatpush3.bf16.msra.mxu0 %v3124_v42 }
 0x223   :  { %2619 = vmatprep.subr.bf16.mxu0 %v2920_v0 }
 0x225   :  { %2349 = vmatmul.mubr.f32.vlgmr.msra.gmra.mrb[2].mxu0 %v2922_v1 }
 0x226   :  { %2621 = vmatpush3.bf16.msra.mxu0 %v3115_v38  ;;  %2381 = vmatprep.mubr.msk.f32.mxu0 %vm2921_vm0, %v2922_v1 }
 0x227   :  { %2622 = vmatprep.subr.bf16.mxu0 %v2920_v0 }
 0x22a   :  { %2624 = vmatpush3.bf16.msra.mxu0 %v3124_v42 }
 0x22b   :  { %2631 = vmatprep.subr.bf16.mxu0 %v2920_v0 }
 0x2ee   :  { %v649_v43 = vpop.f32.mrb[4].mxu1 }
 0x2ef   :  { %v654_v44 = vrot.slane %v649_v43, 4  ;;  %v2361_v45 = vpop.f32.mrb[5].mxu1 }
 0x2f1   :  { %v656_v46 = vadd.f32 %v654_v44, %v3097_v23 }
 0x2f3   :  { %2766 = vtanh.f32 %v656_v46 }
 0x2f8   :  { %v573_v48 = vpop.f32.mrb[2].mxu0 }
 0x2f9   :  { %v2727_v49 = vadd.f32 %v3144_v47, %v573_v48  ;;  %v2350_v50 = vpop.f32.mrb[3].mxu0 }
 0x2fb   :  { %2768 = vtanh.f32 %v2727_v49 }
 0x2fd   :  { %v2767_v51 = vpop.eup %2766 }
 0x2fe   :  { %v658_v52 = vmax.f32 %v2767_v51, 0.0  ;;  %v809_v55 = vrot.slane %v2767_v51, 4 }
 0x300   :  { %v660_v53 = vrot.slane %v658_v52, 4 }
 0x302   :  { %2371 = vmatmul.mubr.msk.f32.vlgmr.msra.gmra.mrb[6].mxu1 %vm198_vm5, %v660_v53 }
 0x303   :  { %2627 = vmatpush3.bf16.msra.mxu1 %v3058_v8  ;;  %2392 = vmatprep.mubr.msk.f32.mxu1 %vm2921_vm0, %v2922_v1 }
 0x304   :  { %2628 = vmatprep.subr.bf16.mxu1 %v2920_v0 }
 0x305   :  { %v2769_v54 = vpop.eup %2768 }
 0x306   :  { %2382 = vmatmul.mubr.msk.f32.vlgmr.msra.gmra.mrb[4].mxu0 %vm198_vm5, %v2769_v54 }
 0x307   :  { %2630 = vmatpush3.bf16.msra.mxu1 %v3068_v12  ;;  %2633 = vmatpush3.bf16.msra.mxu0 %v3084_v16 }
 0x308   :  { %2637 = vmatprep.subr.bf16.mxu1 %v2920_v0  ;;  %2634 = vmatprep.subr.bf16.mxu0 %v2920_v0 }
 0x309   :  { %2403 = vmatprep.mubr.msk.f32.mxu0 %vm2921_vm0, %v2922_v1 }
 0x30a   :  { %2393 = vmatmul.mubr.msk.f32.vlgmr.msra.gmra.mrb[8].mxu1 %vm198_vm5, %v809_v55 }
 0x30b   :  { %2639 = vmatpush3.bf16.msra.mxu1 %v3115_v38  ;;  %2414 = vmatprep.mubr.msk.f32.mxu1 %vm2921_vm0, %v2922_v1 }
 0x30c   :  { %2640 = vmatprep.subr.bf16.mxu1 %v2920_v0  ;;  %2636 = vmatpush3.bf16.msra.mxu0 %v3087_v18 }
 0x30d   :  { %2643 = vmatprep.subr.bf16.mxu0 %v2920_v0 }
 0x30f   :  { %2642 = vmatpush3.bf16.msra.mxu1 %v3124_v42 }
 0x310   :  { %2649 = vmatprep.subr.bf16.mxu1 %v2920_v0 }
 0x3d9   :  { %v802_v56 = vpop.f32.mrb[4].mxu0 }
 0x3da   :  { %v2728_v57 = vadd.f32 %v3144_v47, %v802_v56  ;;  %v2383_v58 = vpop.f32.mrb[5].mxu0 }
 0x3db   :  { %v2027_v58 = vld [vmem:[%s3310_s7 + $0x18] sm:$0xff] }
 0x3dc   :  { %2770 = vtanh.f32 %v2728_v57  ;;  %v2024_v57 = vld [vmem:[%s3310_s7] sm:$0xff] }
 0x3dd   :  { %v878_v59 = vpop.f32.mrb[8].mxu1 }
 0x3de   :  { %v883_v60 = vrot.slane %v878_v59, 2  ;;  %v2394_v61 = vpop.f32.mrb[9].mxu1 }
 0x3e0   :  { %v885_v62 = vadd.f32 %v883_v60, %v3097_v23 }
 0x3e2   :  { %2772 = vtanh.f32 %v885_v62 }
 0x3e6   :  { %v2771_v63 = vpop.eup %2770 }
 0x3e7   :  { %2415 = vmatmul.mubr.msk.f32.vlgmr.msra.gmra.mrb[6].mxu1 %vm198_vm5, %v2771_v63 }
 0x3e8   :  { %2651 = vmatpush3.bf16.msra.mxu1 %v3084_v16  ;;  %2436 = vmatprep.mubr.msk.f32.mxu1 %vm2921_vm0, %v2922_v1 }
 0x3e9   :  { %2652 = vmatprep.subr.bf16.mxu1 %v2920_v0 }
 0x3ec   :  { %v2773_v2 = vpop.eup %2772  ;;  %2654 = vmatpush3.bf16.msra.mxu1 %v3087_v18 }
 0x3ed   :  { %v887_v3 = vmax.f32 %v2773_v2, 0.0  ;;  %2661 = vmatprep.subr.bf16.mxu1 %v2920_v0  ;;  %v1038_v5 = vrot.slane %v2773_v2, 6 }
 0x3ef   :  { %v889_v4 = vrot.slane %v887_v3, 6 }
 0x3f1   :  { %2404 = vmatmul.mubr.msk.f32.vlgmr.msra.gmra.mrb[6].mxu0 %vm198_vm5, %v889_v4 }
 0x3f2   :  { %2645 = vmatpush3.bf16.msra.mxu0 %v3058_v8  ;;  %2425 = vmatprep.mubr.msk.f32.mxu0 %vm2921_vm0, %v2922_v1 }
 0x3f3   :  { %2646 = vmatprep.subr.bf16.mxu0 %v2920_v0 }
 0x3f6   :  { %2648 = vmatpush3.bf16.msra.mxu0 %v3068_v12 }
 0x3f7   :  { %2655 = vmatprep.subr.bf16.mxu0 %v2920_v0 }
 0x3f9   :  { %2426 = vmatmul.mubr.msk.f32.vlgmr.msra.gmra.mrb[8].mxu0 %vm198_vm5, %v1038_v5 }
 0x3fa   :  { %2657 = vmatpush3.bf16.msra.mxu0 %v3115_v38  ;;  %2447 = vmatprep.mubr.msk.f32.mxu0 %vm2921_vm0, %v2922_v1 }
 0x3fb   :  { %2658 = vmatprep.subr.bf16.mxu0 %v2920_v0 }
 0x3fe   :  { %2660 = vmatpush3.bf16.msra.mxu0 %v3124_v42 }
 0x3ff   :  { %2667 = vmatprep.subr.bf16.mxu0 %v2920_v0 }
 0x4ba   :  { %v1031_v6 = vpop.f32.mrb[6].mxu1 }
 0x4bb   :  { %v2729_v7 = vadd.f32 %v3144_v47, %v1031_v6  ;;  %v2416_v9 = vpop.f32.mrb[7].mxu1 }
 0x4bd   :  { %2774 = vtanh.f32 %v2729_v7 }
 0x4c7   :  { %v2775_v10 = vpop.eup %2774 }
 0x4c8   :  { %2448 = vmatmul.mubr.msk.f32.vlgmr.msra.gmra.mrb[6].mxu0 %vm198_vm5, %v2775_v10 }
 0x4c9   :  { %2669 = vmatpush3.bf16.msra.mxu0 %v3084_v16  ;;  %2469 = vmatprep.mubr.msk.f32.mxu0 %vm2921_vm0, %v2922_v1 }
 0x4ca   :  { %2670 = vmatprep.subr.bf16.mxu0 %v2920_v0 }
 0x4cc   :  { %v1107_v11 = vpop.f32.mrb[8].mxu0 }
 0x4cd   :  { %v1111_v13 = vadd.f32 %v1107_v11, %v3095_v21  ;;  %v2427_v14 = vpop.f32.mrb[9].mxu0  ;;  %2672 = vmatpush3.bf16.msra.mxu0 %v3087_v18 }
 0x4ce   :  { %2679 = vmatprep.subr.bf16.mxu0 %v2920_v0 }
 0x4cf   :  { %2776 = vtanh.f32 %v1111_v13 }
 0x4d9   :  { %v2777_v15 = vpop.eup %2776 }
 0x4da   :  { %v1113_v17 = vmax.f32 %v2777_v15, 0.0 }
 0x4dc   :  { %2437 = vmatmul.mubr.msk.f32.vlgmr.msra.gmra.mrb[10].mxu1 %vm198_vm5, %v1113_v17 }
 0x4dd   :  { %2663 = vmatpush3.bf16.msra.mxu1 %v3058_v8  ;;  %2458 = vmatprep.mubr.msk.f32.mxu1 %vm2921_vm0, %v2922_v1 }
 0x4de   :  { %2664 = vmatprep.subr.bf16.mxu1 %v2920_v0 }
 0x4e1   :  { %2666 = vmatpush3.bf16.msra.mxu1 %v3068_v12 }
 0x4e2   :  { %2673 = vmatprep.subr.bf16.mxu1 %v2920_v0 }
 0x4e4   :  { %2459 = vmatmul.mubr.msk.f32.vlgmr.msra.gmra.mrb[12].mxu1 %vm198_vm5, %v2777_v15 }
 0x4e5   :  { %2675 = vmatpush3.bf16.msra.mxu1 %v3115_v38  ;;  %2480 = vmatprep.mubr.msk.f32.mxu1 %vm2921_vm0, %v2922_v1 }
 0x4e6   :  { %2676 = vmatprep.subr.bf16.mxu1 %v2920_v0 }
 0x4e9   :  { %2678 = vmatpush3.bf16.msra.mxu1 %v3124_v42 }
 0x4ea   :  { %2685 = vmatprep.subr.bf16.mxu1 %v2920_v0 }
 0x59b   :  { %v1256_v19 = vpop.f32.mrb[6].mxu0 }
 0x59c   :  { %v2730_v20 = vadd.f32 %v3144_v47, %v1256_v19  ;;  %v2449_v22 = vpop.f32.mrb[7].mxu0 }
 0x59e   :  { %2778 = vtanh.f32 %v2730_v20 }
 0x5a8   :  { %v2779_v23 = vpop.eup %2778 }
 0x5a9   :  { %2481 = vmatmul.mubr.msk.f32.vlgmr.msra.gmra.mrb[10].mxu1 %vm198_vm5, %v2779_v23 }
 0x5aa   :  { %2687 = vmatpush3.bf16.msra.mxu1 %v3084_v16  ;;  %2502 = vmatprep.mubr.msk.f32.mxu1 %vm2921_vm0, %v2922_v1 }
 0x5ab   :  { %2688 = vmatprep.subr.bf16.mxu1 %v2920_v0 }
 0x5ae   :  { %2690 = vmatpush3.bf16.msra.mxu1 %v3087_v18 }
 0x5af   :  { %2697 = vmatprep.subr.bf16.mxu1 %v2920_v0 }
 0x5b7   :  { %v1331_v24 = vpop.f32.mrb[12].mxu1 }
 0x5b8   :  { %v1336_v25 = vrot.slane %v1331_v24, 6  ;;  %v2460_v26 = vpop.f32.mrb[13].mxu1 }
 0x5ba   :  { %v1338_v27 = vadd.f32 %v1336_v25, %v3095_v21 }
 0x5bc   :  { %2780 = vtanh.f32 %v1338_v27 }
 0x5c6   :  { %v2781_v28 = vpop.eup %2780 }
 0x5c7   :  { %v1340_v29 = vmax.f32 %v2781_v28, 0.0  ;;  %v1491_v31 = vrot.slane %v2781_v28, 2 }
 0x5c9   :  { %v1342_v30 = vrot.slane %v1340_v29, 2 }
 0x5cb   :  { %2470 = vmatmul.mubr.msk.f32.vlgmr.msra.gmra.mrb[10].mxu0 %vm198_vm5, %v1342_v30 }
 0x5cc   :  { %2681 = vmatpush3.bf16.msra.mxu0 %v3058_v8  ;;  %2491 = vmatprep.mubr.msk.f32.mxu0 %vm2921_vm0, %v2922_v1 }
 0x5cd   :  { %2682 = vmatprep.subr.bf16.mxu0 %v2920_v0 }
 0x5d0   :  { %2684 = vmatpush3.bf16.msra.mxu0 %v3068_v12 }
 0x5d1   :  { %2691 = vmatprep.subr.bf16.mxu0 %v2920_v0 }
 0x5d3   :  { %2492 = vmatmul.mubr.msk.f32.vlgmr.msra.gmra.mrb[12].mxu0 %vm198_vm5, %v1491_v31 }
 0x5d4   :  { %2693 = vmatpush3.bf16.msra.mxu0 %v3115_v38  ;;  %2513 = vmatprep.mubr.msk.f32.mxu0 %vm2921_vm0, %v2922_v1 }
 0x5d5   :  { %2694 = vmatprep.subr.bf16.mxu0 %v2920_v0 }
 0x5d8   :  { %2696 = vmatpush3.bf16.msra.mxu0 %v3124_v42 }
 0x5d9   :  { %2703 = vmatprep.subr.bf16.mxu0 %v2920_v0 }
 0x67c   :  { %v1484_v32 = vpop.f32.mrb[10].mxu1 }
 0x67d   :  { %v2731_v33 = vadd.f32 %v3144_v47, %v1484_v32  ;;  %v2482_v34 = vpop.f32.mrb[11].mxu1 }
 0x67f   :  { %2782 = vtanh.f32 %v2731_v33 }
 0x689   :  { %v2783_v35 = vpop.eup %2782 }
 0x68a   :  { %2514 = vmatmul.mubr.msk.f32.vlgmr.msra.gmra.mrb[10].mxu0 %vm198_vm5, %v2783_v35 }
 0x68b   :  { %2705 = vmatpush3.bf16.msra.mxu0 %v3084_v16  ;;  %2535 = vmatprep.mubr.msk.f32.mxu0 %vm2921_vm0, %v2922_v1 }
 0x68c   :  { %2706 = vmatprep.subr.bf16.mxu0 %v2920_v0 }
 0x68f   :  { %2708 = vmatpush3.bf16.msra.mxu0 %v3087_v18 }
 0x690   :  { %2715 = vmatprep.subr.bf16.mxu0 %v2920_v0 }
 0x6a6   :  { %v1560_v36 = vpop.f32.mrb[12].mxu0 }
 0x6a7   :  { %v1565_v37 = vrot.slane %v1560_v36, 4  ;;  %v2493_v39 = vpop.f32.mrb[13].mxu0 }
 0x6a9   :  { %v1567_v40 = vadd.f32 %v1565_v37, %v3095_v21 }
 0x6ab   :  { %2784 = vtanh.f32 %v1567_v40 }
 0x6b5   :  { %v2785_v41 = vpop.eup %2784 }
 0x6b6   :  { %v1569_v43 = vmax.f32 %v2785_v41, 0.0  ;;  %v1720_v16 = vrot.slane %v2785_v41, 4 }
 0x6b8   :  { %v1571_v44 = vrot.slane %v1569_v43, 4 }
 0x6ba   :  { %2503 = vmatmul.mubr.msk.f32.vlgmr.msra.gmra.mrb[14].mxu1 %vm198_vm5, %v1571_v44 }
 0x6bb   :  { %2699 = vmatpush3.bf16.msra.mxu1 %v3058_v8  ;;  %2524 = vmatprep.mubr.msk.f32.mxu1 %vm2921_vm0, %v2922_v1 }
 0x6bc   :  { %2700 = vmatprep.subr.bf16.mxu1 %v2920_v0 }
 0x6bf   :  { %2702 = vmatpush3.bf16.msra.mxu1 %v3068_v12 }
 0x6c0   :  { %2709 = vmatprep.subr.bf16.mxu1 %v2920_v0 }
 0x6c2   :  { %2525 = vmatmul.mubr.msk.f32.vlgmr.msra.gmra.mrb[16].mxu1 %vm198_vm5, %v1720_v16 }
 0x6c3   :  { %2711 = vmatpush3.bf16.msra.mxu1 %v3115_v38  ;;  %2546 = vmatprep.mubr.msk.f32.mxu1 %vm2921_vm0, %v2922_v1 }
 0x6c4   :  { %2712 = vmatprep.subr.bf16.mxu1 %v2920_v0 }
 0x6c7   :  { %2714 = vmatpush3.bf16.msra.mxu1 %v3124_v42 }
 0x6c8   :  { %2721 = vmatprep.subr.bf16.mxu1 %v2920_v0 }
 0x75d   :  { %v1713_v8 = vpop.f32.mrb[10].mxu0 }
 0x75e   :  { %v2732_v18 = vadd.f32 %v3144_v47, %v1713_v8  ;;  %v2515_v12 = vpop.f32.mrb[11].mxu0 }
 0x760   :  { %2786 = vtanh.f32 %v2732_v18 }
 0x76a   :  { %v2787_v45 = vpop.eup %2786 }
 0x76b   :  { %2547 = vmatmul.mubr.msk.f32.vlgmr.msra.gmra.mrb[14].mxu1 %vm198_vm5, %v2787_v45 }
 0x76c   :  { %2568 = vmatprep.mubr.msk.f32.mxu1 %vm2921_vm0, %v2922_v1 }
 0x795   :  { %v1789_v46 = vpop.f32.mrb[16].mxu1 }
 0x796   :  { %v1794_v48 = vrot.slane %v1789_v46, 2  ;;  %v2526_v49 = vpop.f32.mrb[17].mxu1 }
 0x798   :  { %v1796_v50 = vadd.f32 %v1794_v48, %v3095_v21 }
 0x79a   :  { %2788 = vtanh.f32 %v1796_v50 }
 0x7a4   :  { %v2789_v51 = vpop.eup %2788 }
 0x7a5   :  { %v1798_v52 = vmax.f32 %v2789_v51, 0.0 }
 0x7a7   :  { %v1800_v53 = vrot.slane %v1798_v52, 6 }
 0x7a9   :  { %2536 = vmatmul.mubr.msk.f32.vlgmr.msra.gmra.mrb[14].mxu0 %vm198_vm5, %v1800_v53 }
 0x7aa   :  { %2717 = vmatpush3.bf16.msra.mxu0 %v3115_v38  ;;  %2557 = vmatprep.mubr.msk.f32.mxu0 %vm2921_vm0, %v2922_v1  ;;  %v2025_v1 = vld [vmem:[%s3310_s7 + $0x8] sm:$0xff] }
 0x7ab   :  { %2718 = vmatprep.subr.bf16.mxu0 %v2920_v0  ;;  %v2722_v38 = vpack.c.bf16 %v2025_v1, %v2024_v57 }
 0x7ad   :  { %2723 = vmatpush3.bf16.msra.mxu1 %v2722_v38 }
 0x7ae   :  { %2720 = vmatpush3.bf16.msra.mxu0 %v3124_v42  ;;  %2724 = vmatprep.subr.bf16.mxu1 %v2920_v0  ;;  %v2026_v42 = vld [vmem:[%s3310_s7 + $0x10] sm:$0xff]  ;;  %v2158_v0 = vld [vmem:[%s3311_s8] ss:$0 sm:$0xff]  ;;  %s2924_s7 = smov [#allocation10]  }
 0x7af   :  { %v2725_v59 = vpack.c.bf16 %v2027_v58, %v2026_v42  ;;  %s2120_s13 = sshll.u32 %s2924_s7, 4  ;;  %s2121_s13 = int_to_ptr.vmem [resolvable:$true] %s2120_s13 }
 0x7b0   :  { %s2884_s1 = scalar_lea.vmem %s2121_s13, 32  ;;  %p2889_p5 = scmp.lt.s32.totalorder %s2121_s13, %s2121_s13 }
 0x7b1   :  { %2726 = vmatpush3.bf16.msra.mxu1 %v2725_v59  ;;  %p2885_p4 = scmp.ne.s32.totalorder %s2121_s13, %s2884_s1  ;;  %p2890_p6 = scmp.lt.s32.totalorder %s2884_s1, %s2884_s1 }
 0x7b3   :  { %p2891_p7 = por %p2890_p6, %p2889_p5 }
 0x7b5   :  { %p2892_p8 = pnand %p2891_p7, %p2885_p4 }
 0x83e   :  { %v1942_v54 = vpop.f32.mrb[14].mxu1 }
 0x83f   :  { %v2733_v55 = vadd.f32 %v3144_v47, %v1942_v54  ;;  %v2548_v56 = vpop.f32.mrb[15].mxu1 }
 0x841   :  { %2790 = vtanh.f32 %v2733_v55 }
 0x84b   :  { %v2791_v21 = vpop.eup %2790 }
 0x84c   :  { %2558 = vmatmul.mubr.msk.f32.vlgmr.msra.gmra.mrb[14].mxu0 %vm198_vm5, %v2791_v21 }
 0x91f   :  { %v2017_v60 = vpop.f32.mrb[14].mxu0 }
 0x920   :  { %v2734_v61 = vadd.f32 %v3144_v47, %v2017_v60  ;;  %v2559_v62 = vpop.f32.mrb[15].mxu0 }
 0x922   :  { %2792 = vtanh.f32 %v2734_v61 }
 0x92c   :  { %v2793_v63 = vpop.eup %2792 }
 0x92d   :  { %v2023_v2 = vmax.f32 %v2793_v63, 0.0 }
 0x92f   :  { %2569 = vmatmul.mubr.msk.f32.vlgmr.msra.gmra.mrb[18].mxu1 %vm198_vm5, %v2023_v2 }
 0xa02   :  { %v2104_v3 = vpop.f32.mrb[18].mxu1 }
 0xa03   :  { %v2105_v4 = vadd.f32 %v2158_v0, %v2104_v3  ;;  %v2570_v5 = vpop.f32.mrb[19].mxu1 }
 0xa05   :  { %v2108_v6 = vmul.f32 0.5, %v2105_v4 }
 0xa07   :  { %2794 = vtanh.f32 %v2108_v6 }
 0xa11   :  { %v2795_v7 = vpop.eup %2794 }
 0xa12   :  { %v2110_v9 = vadd.f32 1.0, %v2795_v7 }
 0xa14   :  { %v2111_v47 = vmul.f32 0.5, %v2110_v9 }
 0xa16   :  { %2113 = vst.msk [vmem:[#allocation10] sm:$0x3] %vm2112_vm6, %v2111_v47 }
 0xa17   :  { %2895 = shalt.err (!%p2892_p8)
}
 0xa18   :  { %s2896_s14 = scalar_lea.hbm %s3312_s9, 32 }
 0xa19   :  { %p2897_p9 = scmp.ne.s32.totalorder %s3312_s9, %s2896_s14  ;;  %p2900_p10 = scmp.lt.u32.totalorder %s2896_s14, %s3312_s9 }
 0xa1b   :  { %p2902_p11 = pnand %p2900_p10, %p2897_p9 }
 0xa1d   :  { %2905 = shalt.err (!%p2902_p11)
}
 0xa1e   :  { %2123 = dma.vmem_to_hbm [thread:$0]  %s2121_s13, 32, %s3312_s9, [#allocation4]  }
 0xa1f   :  { %2912 = dma.done.wait [#allocation4], 32  }
 0xa20   :  { %2913 = vsyncadd [#allocation4], 4294967264 }
 0xa21   :  { %2127 = vsyncpa [#allocation3], 1 }
 0xa22   :  { %2128 = vsyncpa [#allocation6], 1 }
 0xa23   :  { %2129 = vsyncpa [#allocation9], 1 }
 0xa24   :  { %2130 = vsyncpa [#allocation4], 1 }

</bundles_post_ra>
